<compile_context>
chip_gen: v7x
topology: tpu7x:2x2x1
jax: 0.10.0
libtpu: 0.0.40
codegen_flags: <defaults>
</compile_context>

<pallas_src>
import functools

import numpy as np
import jax
import jax.numpy as jnp
from jax.experimental import pallas as pl
from jax.experimental.pallas import tpu as pltpu


# ----------------------- host-side NURBS precompute -------------------------
# (one-time parameter setup mirroring CurveEval.__init__; not the hot path)

def gen_knot_vector(p, n):
    m = p + n + 1
    num_segments = m - 2 * (p + 1) + 1
    knot_vector = [0.0 for _ in range(p)]
    knot_vector += list(np.linspace(0.0, 1.0, num_segments + 1))
    knot_vector += [1.0 for _ in range(p)]
    return np.array(knot_vector, dtype=np.float64)


def find_span(n, p, u, U):
    # Piegl & Tiller A2.1 ; n = num_ctrl_pts - 1
    if u >= U[n + 1]:
        return n
    if u <= U[p]:
        return p
    low, high = p, n + 1
    mid = (low + high) // 2
    while u < U[mid] or u >= U[mid + 1]:
        if u < U[mid]:
            high = mid
        else:
            low = mid
        mid = (low + high) // 2
    return mid


def basis_funs(i, u, p, U):
    # Piegl & Tiller A2.2
    N = np.zeros(p + 1, dtype=np.float64)
    left = np.zeros(p + 1, dtype=np.float64)
    right = np.zeros(p + 1, dtype=np.float64)
    N[0] = 1.0
    for j in range(1, p + 1):
        left[j] = u - U[i + 1 - j]
        right[j] = U[i + j] - u
        saved = 0.0
        for r in range(j):
            temp = N[r] / (right[r + 1] + left[j - r])
            N[r] = saved + right[r + 1] * temp
            saved = left[j - r] * temp
        N[j] = saved
    return N


def pre_compute_basis(u, U, m, p):
    out_dim = u.shape[0]
    n = m - 1
    uspan = np.zeros(out_dim, dtype=np.int32)
    Nu = np.zeros((out_dim, p + 1), dtype=np.float32)
    for t in range(out_dim):
        span = find_span(n, p, float(u[t]), U)
        uspan[t] = span
        Nu[t] = basis_funs(span, float(u[t]), p, U).astype(np.float32)
    return uspan, Nu


# ------------------------------ Pallas kernel --------------------------------

def _curve_eval_kernel(a_ref, c_ref, cw_ref, o_ref):
    # a_ref : (out_dim, m)          dense B-spline basis matrix (resident, const index_map)
    # c_ref : (m, lane_tile)        packed homogeneous control points (lane-dense)
    # cw_ref: (m, lane_tile)        weights replicated across each group's lanes
    # o_ref : (out_dim, lane_tile)  packed rational curve points (lane-dense stores)
    a = a_ref[...]
    num = jnp.dot(a, c_ref[...], preferred_element_type=jnp.float32)
    den = jnp.dot(a, cw_ref[...], preferred_element_type=jnp.float32)
    # NURBS weights are positive and well-scaled -> approx reciprocal (EUP slot,
    # nearly free) + one Newton step recovers ~f32 accuracy. Use approx=False /
    # a true divide if the weight range is not controlled.
    inv = pl.reciprocal(den, approx=True)
    inv = inv * (2.0 - den * inv)
    o_ref[...] = (num * inv).astype(o_ref.dtype)


@functools.partial(jax.jit, static_argnums=(2,))
def curve_eval_pallas(ctrl_pts, basis_mat, dim):
    B, m, group = ctrl_pts.shape
    assert group == dim + 1
    assert group <= 128  # TODO(synk): multi-tile groups for dimension >= 128
    out_dim = basis_mat.shape[0]

    # --- lane packing ---------------------------------------------------------
    # Pad each group to the next power of two (a divisor of 128) so groups never
    # straddle a lane tile; fold batch into the MXU N dimension.
    gpad = 1 << (group - 1).bit_length()
    N = B * gpad

    TILE = 512
    if N <= TILE:
        lane_tile = max(128, ((N + 127) // 128) * 128)
        n_tiles = 1
    else:
        lane_tile = TILE
        n_tiles = pl.cdiv(N, lane_tile)
    N_pad = n_tiles * lane_tile

    # (B, m, group) -> (m, B, gpad) -> (m, N)
    c = jnp.transpose(ctrl_pts, (1, 0, 2))                     # (m, B, group)
    if gpad > group:
        c = jnp.concatenate(
            [c, jnp.zeros((m, B, gpad - group), c.dtype)], axis=-1)
    c = c.reshape(m, N)

    # Weight lanes replicated across each group's gpad lanes -> (m, N)
    w = jnp.transpose(ctrl_pts[:, :, dim])                     # (m, B)
    cw = jnp.broadcast_to(w[:, :, None], (m, B, gpad)).reshape(m, N)

    if N_pad > N:
        c = jnp.pad(c, ((0, 0), (0, N_pad - N)))                              # values dropped
        cw = jnp.pad(cw, ((0, 0), (0, N_pad - N)), constant_values=1.0)       # w=1: safe recip

    # --- VMEM budget / cost hints --------------------------------------------
    f32b = 4
    per_step_vmem = f32b * (
        2 * 2 * m * lane_tile          # c + cw, double-buffered
        + 2 * out_dim * lane_tile      # output, double-buffered
        + 2 * out_dim * m)             # resident A
    vmem_limit = int(min(max(2 * per_step_vmem, 32 * 1024 * 1024),
                         100 * 1024 * 1024))

    cost = pl.CostEstimate(
        flops=2 * 2 * out_dim * m * N_pad + 3 * out_dim * N_pad,
        transcendentals=out_dim * N_pad,
        bytes_accessed=f32b * (out_dim * m + 2 * m * N_pad + out_dim * N_pad))

    packed = pl.pallas_call(
        _curve_eval_kernel,
        out_shape=jax.ShapeDtypeStruct((out_dim, N_pad), jnp.float32),
        grid=(n_tiles,),
        in_specs=[
            pl.BlockSpec((out_dim, m), lambda i: (0, 0)),       # A (resident)
            pl.BlockSpec((m, lane_tile), lambda i: (0, i)),     # packed ctrl pts
            pl.BlockSpec((m, lane_tile), lambda i: (0, i)),     # replicated weights
        ],
        out_specs=pl.BlockSpec((out_dim, lane_tile), lambda i: (0, i)),
        compiler_params=pltpu.CompilerParams(
            dimension_semantics=("parallel",),
            vmem_limit_bytes=vmem_limit),
        cost_estimate=cost,
    )(basis_mat, c, cw)

    # Unpack: (out_dim, N_pad) -> (B, out_dim, dim)   (layout plumbing only)
    out = packed[:, :N].reshape(out_dim, B, gpad)[:, :, :dim]
    return jnp.transpose(out, (1, 0, 2))


# ------------------------------ module wrapper --------------------------------

class CurveEvalPallas:
    """JAX/Pallas equivalent of CurveEval(m, dimension, p, out_dim, method='tc')."""

    def __init__(self, m, knot_v=None, dimension=3, p=2, out_dim=32):
        self.m = m
        self._dimension = dimension
        self.p = p
        self.out_dim = out_dim
        self.U = gen_knot_vector(p, m) if knot_v is None else np.asarray(knot_v)
        self.u = np.linspace(0.0, 1.0, out_dim).astype(np.float32)
        self.uspan, self.Nu = pre_compute_basis(self.u, self.U, m, p)

        # Fold the gather input[:, uspan - p + j, :] into a dense (out_dim, m)
        # basis matrix so the kernel hot path is a single MXU matmul.
        # TODO(synk): banded/sparse A for large m (see header).
        A = np.zeros((out_dim, m), dtype=np.float32)
        for t in range(out_dim):
            for j in range(p + 1):
                A[t, self.uspan[t] - p + j] = self.Nu[t, j]
        self.A = jnp.asarray(A)

    def __call__(self, ctrl_pts):
        return curve_eval_pallas(ctrl_pts, self.A, self._dimension)


# ----------------------------------- main -------------------------------------

if __name__ == "__main__":
    B, m, dim, p, out_dim = 2, 16, 3, 2, 32

    key = jax.random.PRNGKey(0)
    k_xyz, k_w = jax.random.split(key)
    xyz = jax.random.normal(k_xyz, (B, m, dim), dtype=jnp.float32)
    w = jax.random.uniform(k_w, (B, m, 1), dtype=jnp.float32, minval=0.5, maxval=1.5)
    ctrl_pts = jnp.concatenate([xyz, w], axis=-1)          # (B, m, dim+1)

    module = CurveEvalPallas(m, dimension=dim, p=p, out_dim=out_dim)
    out = module(ctrl_pts)
    out = jax.block_until_ready(out)

    # Pure-numpy reference identical to the 'tc' branch of CurveEval.forward.
    cn = np.asarray(ctrl_pts)
    Nu, uspan = module.Nu, module.uspan
    curves = Nu[:, 0][None, :, None] * cn[:, (uspan - p), :]
    for j in range(1, p + 1):
        curves = curves + Nu[:, j][None, :, None] * cn[:, (uspan - p + j), :]
    ref = curves[:, :, :dim] / curves[:, :, dim:dim + 1]

    np.testing.assert_allclose(np.asarray(out), ref, rtol=1e-5, atol=1e-5)
    print("KERNEL_OK")
</pallas_src>

<mosaic_0001>
module attributes {stable_mosaic.version = 11 : i64} {
  func.func @_curve_eval_kernel(%arg0: i32, %arg1: memref<32x16xf32, #tpu.memory_space<vmem>>, %arg2: memref<16x128xf32, #tpu.memory_space<vmem>>, %arg3: memref<16x128xf32, #tpu.memory_space<vmem>>, %arg4: memref<32x128xf32, #tpu.memory_space<vmem>>) attributes {dimension_semantics = [#tpu.dimension_semantics<parallel>], iteration_bounds = array<i64: 1>, scalar_prefetch = 0 : i64, scratch_operands = 0 : i64, tpu.core_type = #tpu.core_type<tc>, window_params = [{pipeline_mode = #tpu.pipeline_mode<synchronous>, transform_indices = @transform_0, window_bounds = array<i64: 32, 16>}, {transform_indices = @transform_1, window_bounds = array<i64: 16, 128>}, {transform_indices = @transform_2, window_bounds = array<i64: 16, 128>}, {transform_indices = @transform_3, window_bounds = array<i64: 32, 128>}]} {
    %c0 = arith.constant 0 : index
    %c0_0 = arith.constant 0 : index
    %0 = vector.load %arg1[%c0, %c0_0] : memref<32x16xf32, #tpu.memory_space<vmem>>, vector<32x16xf32>
    %c0_1 = arith.constant 0 : index
    %c0_2 = arith.constant 0 : index
    %1 = vector.load %arg2[%c0_1, %c0_2] : memref<16x128xf32, #tpu.memory_space<vmem>>, vector<16x128xf32>
    %cst = arith.constant dense<0.000000e+00> : vector<32x128xf32>
    %2 = tpu.matmul %0, %1, %cst {dimension_numbers = #tpu.dot_dimension_numbers<[1], [0], [0], [1], [0, 0, 1, 1], [], []>} : vector<32x16xf32>, vector<16x128xf32>, vector<32x128xf32> -> vector<32x128xf32>
    %c0_3 = arith.constant 0 : index
    %c0_4 = arith.constant 0 : index
    %3 = vector.load %arg3[%c0_3, %c0_4] : memref<16x128xf32, #tpu.memory_space<vmem>>, vector<16x128xf32>
    %cst_5 = arith.constant dense<0.000000e+00> : vector<32x128xf32>
    %4 = tpu.matmul %0, %3, %cst_5 {dimension_numbers = #tpu.dot_dimension_numbers<[1], [0], [0], [1], [0, 0, 1, 1], [], []>} : vector<32x16xf32>, vector<16x128xf32>, vector<32x128xf32> -> vector<32x128xf32>
    %5 = tpu.reciprocal %4 {approx = true} : vector<32x128xf32> -> vector<32x128xf32>
    %6 = arith.mulf %4, %5 : vector<32x128xf32>
    %cst_6 = arith.constant 2.000000e+00 : f32
    %7 = vector.broadcast %cst_6 : f32 to vector<32x128xf32>
    %8 = arith.subf %7, %6 : vector<32x128xf32>
    %9 = arith.mulf %5, %8 : vector<32x128xf32>
    %10 = arith.mulf %2, %9 : vector<32x128xf32>
    %c0_7 = arith.constant 0 : index
    %c0_8 = arith.constant 0 : index
    %11 = vector.load %arg4[%c0_7, %c0_8] : memref<32x128xf32, #tpu.memory_space<vmem>>, vector<32x128xf32>
    tpu.vector_store %arg4[%c0_7, %c0_8], %10 {strides = array<i32>} : memref<32x128xf32, #tpu.memory_space<vmem>>, vector<32x128xf32>,
    return
  }
  func.func @transform_0(%arg0: i32) -> (i32, i32) {
    %c0_i32 = arith.constant 0 : i32
    %c0_i32_0 = arith.constant 0 : i32
    %c0_i32_1 = arith.constant 0 : i32
    return %c0_i32, %c0_i32_0 : i32, i32
  }
  func.func @transform_1(%arg0: i32) -> (i32, i32) {
    %c0_i32 = arith.constant 0 : i32
    %c0_i32_0 = arith.constant 0 : i32
    return %c0_i32, %arg0 : i32, i32
  }
  func.func @transform_2(%arg0: i32) -> (i32, i32) {
    %c0_i32 = arith.constant 0 : i32
    %c0_i32_0 = arith.constant 0 : i32
    return %c0_i32, %arg0 : i32, i32
  }
  func.func @transform_3(%arg0: i32) -> (i32, i32) {
    %c0_i32 = arith.constant 0 : i32
    %c0_i32_0 = arith.constant 0 : i32
    return %c0_i32, %arg0 : i32, i32
  }
}

</mosaic_0001>

<bundles_post_ra>
// kernel: curve_eval_pallas.1
= control target key start
LH: loop header
LB: loop body
LE: loop exit
PB: predicated region body
PF: predicated region fallthrough
CT: control target
= control target key end

     0   :  { %vm20_vm0 = vcmask 130048   ;;  %s353_s2 = inlined_call_operand.vmem [shape: f32[16,128], index: 2, kind: input, shape index: {}]   ;;  %s354_s0 = inlined_call_operand.vmem [shape: f32[32,16], index: 0, kind: input, shape index: {}]   ;;  %s355_s1 = inlined_call_operand.vmem [shape: f32[16,128], index: 1, kind: input, shape index: {}]   ;;  %s356_s3 = inlined_call_operand.vmem [shape: f32[32,128], index: 3, kind: output, shape index: {}]  }
   0x1   :  { %v118_v0 = vld [vmem:[%s353_s2] sm:$0xff]  ;;  %v119_v1 = vld [vmem:[%s353_s2 + $0x8] sm:$0xff]  ;;  %v16_v8 = vld [vmem:[%s354_s0 + $0x10] sm:$0xff] }
   0x2   :  { %v14_v2 = vld [vmem:[%s354_s0] sm:$0xff]  ;;  %v277_v3 = vpack.c.bf16 %v119_v1, %v118_v0  ;;  %v19_v5 = vld [vmem:[%s355_s1 + $0x8] sm:$0xff]  ;;  %v17_v9 = vld [vmem:[%s354_s0 + $0x18] sm:$0xff] }
   0x3   :  { %267 = vmatprep.mubr.msk.f32.mxu1 %vm20_vm0, %v14_v2  ;;  %257 = vmatprep.mubr.msk.f32.mxu0 %vm20_vm0, %v14_v2  ;;  %v18_v4 = vld [vmem:[%s355_s1] sm:$0xff]  ;;  %v15_v7 = vld [vmem:[%s354_s0 + $0x8] sm:$0xff] }
   0x4   :  { %278 = vmatprep.subr.bf16.mxu1 %v277_v3  ;;  %v273_v6 = vpack.c.bf16 %v19_v5, %v18_v4 }
   0x5   :  { %280 = vmatpush3.bf16.msra.mxu1 %v277_v3 }
   0x6   :  { %274 = vmatprep.subr.bf16.mxu0 %v273_v6 }
   0x7   :  { %276 = vmatpush3.bf16.msra.mxu0 %v273_v6 }
   0x8   :  { %268 = vmatmul.mubr.msk.f32.vlgmr.msra.gmra.mrb[0].mxu1 %vm20_vm0, %v15_v7 }
   0x9   :  { %270 = vmatprep.mubr.msk.f32.mxu1 %vm20_vm0, %v16_v8 }
   0xa   :  { %258 = vmatmul.mubr.msk.f32.vlgmr.msra.gmra.mrb[0].mxu0 %vm20_vm0, %v15_v7 }
   0xb   :  { %260 = vmatprep.mubr.msk.f32.mxu0 %vm20_vm0, %v16_v8 }
   0xc   :  { %271 = vmatmul.mubr.msk.f32.gmra.mrb[2].mxu1 %vm20_vm0, %v17_v9 }
   0xe   :  { %261 = vmatmul.mubr.msk.f32.gmra.mrb[2].mxu0 %vm20_vm0, %v17_v9 }
  0xdb   :  { %v269_v10 = vpop.f32.mrb[0].mxu1 }
  0xdc   :  { %281 = vrcp.f32 %v269_v10  ;;  %v186_v11 = vpop.f32.mrb[1].mxu1 }
  0xdd   :  { %283 = vrcp.f32 %v186_v11  ;;  %v259_v12 = vpop.f32.mrb[0].mxu0 }
  0xde   :  { %v99_v13 = vpop.f32.mrb[1].mxu0 }
  0xdf   :  { %v272_v14 = vpop.f32.mrb[2].mxu1 }
  0xe0   :  { %285 = vrcp.f32 %v272_v14  ;;  %v196_v15 = vpop.f32.mrb[3].mxu1 }
  0xe1   :  { %287 = vrcp.f32 %v196_v15  ;;  %v262_v16 = vpop.f32.mrb[2].mxu0 }
  0xe2   :  { %v109_v17 = vpop.f32.mrb[3].mxu0 }
  0xe6   :  { %v282_v18 = vpop.eup %281 }
  0xe7   :  { %v284_v19 = vpop.eup %283  ;;  %v210_v20 = vmul.f32 %v282_v18, %v269_v10 }
  0xe8   :  { %v209_v21 = vmul.f32 %v284_v19, %v186_v11 }
  0xe9   :  { %v214_v22 = vsub.f32 2.0, %v210_v20 }
  0xea   :  { %v286_v23 = vpop.eup %285  ;;  %v213_v24 = vsub.f32 2.0, %v209_v21 }
  0xeb   :  { %v288_v25 = vpop.eup %287  ;;  %v212_v26 = vmul.f32 %v286_v23, %v272_v14  ;;  %v218_v27 = vmul.f32 %v282_v18, %v214_v22 }
  0xec   :  { %v211_v28 = vmul.f32 %v288_v25, %v196_v15  ;;  %v217_v29 = vmul.f32 %v284_v19, %v213_v24 }
  0xed   :  { %v216_v30 = vsub.f32 2.0, %v212_v26  ;;  %v222_v31 = vmul.f32 %v259_v12, %v218_v27 }
  0xee   :  { %v215_v32 = vsub.f32 2.0, %v211_v28  ;;  %v221_v33 = vmul.f32 %v217_v29, %v99_v13 }
  0xef   :  { %226 = vst [vmem:[%s356_s3 + $0x8] sm:$0xff] %v222_v31  ;;  %v220_v34 = vmul.f32 %v286_v23, %v216_v30 }
  0xf0   :  { %225 = vst [vmem:[%s356_s3] sm:$0xff] %v221_v33  ;;  %v219_v35 = vmul.f32 %v288_v25, %v215_v32 }
  0xf1   :  { %v224_v36 = vmul.f32 %v262_v16, %v220_v34 }
  0xf2   :  { %v223_v37 = vmul.f32 %v219_v35, %v109_v17 }
  0xf3   :  { %228 = vst [vmem:[%s356_s3 + $0x18] sm:$0xff] %v224_v36 }
  0xf4   :  { %227 = vst [vmem:[%s356_s3 + $0x10] sm:$0xff] %v223_v37 }

</bundles_post_ra>
